<compile_context>
chip_gen: v6e
topology: v6e:2x2x1
jax: 0.10.0
libtpu: 0.0.40
codegen_flags: <defaults>
</compile_context>

<pallas_src>
import jax
import jax.numpy as jnp
from jax.experimental import pallas as pl
from jax.experimental.pallas import tpu as pltpu

_LANES = 128      # vreg lane width
_SUBLANES = 8     # vreg sublane depth (f32)


def _add_kernel(a_ref, b_ref, o_ref):
    # Single full-tile elementwise add on the VPU.
    o_ref[...] = a_ref[...] + b_ref[...]


@jax.jit
def pallas_add(x701: jax.Array, x686: jax.Array) -> jax.Array:
    """Elementwise add of two same-shape tensors via a Pallas TPU kernel."""
    assert x701.shape == x686.shape
    assert x701.dtype == x686.dtype
    orig_shape = x701.shape

    # Total element count.
    n = 1
    for d in orig_shape:
        n *= d

    # Pad the flat length up to a multiple of 8*128 so the 2D slab is
    # (rows, 128) with rows % 8 == 0 -> fully lane/sublane-dense vregs and
    # unmasked vector stores inside the kernel.
    padded = pl.cdiv(n, _SUBLANES * _LANES) * (_SUBLANES * _LANES)
    rows = padded // _LANES
    pad = padded - n

    a = x701.reshape(n)
    b = x686.reshape(n)
    if pad:
        a = jnp.pad(a, (0, pad))
        b = jnp.pad(b, (0, pad))
    a2d = a.reshape(rows, _LANES)
    b2d = b.reshape(rows, _LANES)

    out2d = pl.pallas_call(
        _add_kernel,
        out_shape=jax.ShapeDtypeStruct((rows, _LANES), a2d.dtype),
        # No grid: one kernel invocation, whole arrays resident in VMEM.
        in_specs=[
            pl.BlockSpec(memory_space=pltpu.MemorySpace.VMEM),
            pl.BlockSpec(memory_space=pltpu.MemorySpace.VMEM),
        ],
        out_specs=pl.BlockSpec(memory_space=pltpu.MemorySpace.VMEM),
        # Reuse x701's (padded) buffer for the output.
        input_output_aliases={0: 0},
    )(a2d, b2d)

    # Strip the padding and restore the original NCHW shape.
    return out2d.reshape(padded)[:n].reshape(orig_shape)


if __name__ == "__main__":
    key = jax.random.PRNGKey(0)
    k1, k2 = jax.random.split(key)

    # Shape implied by the module's forward: [1, 304, 7, 7] (already small).
    shape = (1, 304, 7, 7)
    x701 = jax.random.normal(k1, shape, dtype=jnp.float32)
    x686 = jax.random.normal(k2, shape, dtype=jnp.float32)

    out = pallas_add(x701, x686)
    jax.block_until_ready(out)

    # Correctness check against plain JAX reference.
    ref = x701 + x686
    assert out.shape == shape
    assert out.dtype == jnp.float32
    assert jnp.allclose(out, ref, atol=0.0, rtol=0.0)

    print("KERNEL_OK")
</pallas_src>

<mosaic_0001>
module attributes {stable_mosaic.version = 11 : i64} {
  func.func @_add_kernel(%arg0: memref<120x128xf32, #tpu.memory_space<vmem>>, %arg1: memref<120x128xf32, #tpu.memory_space<vmem>>, %arg2: memref<120x128xf32, #tpu.memory_space<vmem>>) attributes {dimension_semantics = [], scalar_prefetch = 0 : i64, scratch_operands = 0 : i64, tpu.core_type = #tpu.core_type<tc>} {
    %c0 = arith.constant 0 : index
    %c0_0 = arith.constant 0 : index
    %0 = vector.load %arg0[%c0, %c0_0] : memref<120x128xf32, #tpu.memory_space<vmem>>, vector<120x128xf32>
    %c0_1 = arith.constant 0 : index
    %c0_2 = arith.constant 0 : index
    %1 = vector.load %arg1[%c0_1, %c0_2] : memref<120x128xf32, #tpu.memory_space<vmem>>, vector<120x128xf32>
    %2 = arith.addf %0, %1 : vector<120x128xf32>
    %c0_3 = arith.constant 0 : index
    %c0_4 = arith.constant 0 : index
    %3 = vector.load %arg2[%c0_3, %c0_4] : memref<120x128xf32, #tpu.memory_space<vmem>>, vector<120x128xf32>
    tpu.vector_store %arg2[%c0_3, %c0_4], %2 {strides = array<i32>} : memref<120x128xf32, #tpu.memory_space<vmem>>, vector<120x128xf32>,
    return
  }
}

</mosaic_0001>

<bundles_post_ra>
// kernel: pallas_add.1
= control target key start
LH: loop header
LB: loop body
LE: loop exit
PB: predicated region body
PF: predicated region fallthrough
CT: control target
= control target key end

     0   :  { %s225_s0 = inlined_call_operand.vmem [shape: f32[120,128], index: 0, kind: input, shape index: {}, may-alias: {0,2}]   ;;  %s226_s1 = inlined_call_operand.vmem [shape: f32[120,128], index: 1, kind: input, shape index: {}]   ;;  %s227_s2 = inlined_call_operand.vmem [shape: f32[120,128], index: 2, kind: output, shape index: {}, may-alias: {0,2}]  }
   0x1   :  { %v11_v0 = vld [vmem:[%s225_s0] sm:$0xff]  ;;  %v12_v2 = vld [vmem:[%s225_s0 + $0x8] sm:$0xff]  ;;  %v13_v5 = vld [vmem:[%s225_s0 + $0x10] sm:$0xff] }
   0x2   :  { %v26_v1 = vld [vmem:[%s226_s1] sm:$0xff]  ;;  %v27_v4 = vld [vmem:[%s226_s1 + $0x8] sm:$0xff]  ;;  %v28_v6 = vld [vmem:[%s226_s1 + $0x10] sm:$0xff] }
   0x3   :  { %v41_v3 = vadd.f32 %v26_v1, %v11_v0  ;;  %v42_v7 = vadd.f32 %v27_v4, %v12_v2  ;;  %v43_v8 = vadd.f32 %v28_v6, %v13_v5  ;;  %v14_v9 = vld [vmem:[%s225_s0 + $0x18] sm:$0xff]  ;;  %v15_v11 = vld [vmem:[%s225_s0 + $0x20] sm:$0xff]  ;;  %v31_v15 = vld [vmem:[%s226_s1 + $0x28] sm:$0xff] }
   0x4   :  { %v29_v10 = vld [vmem:[%s226_s1 + $0x18] sm:$0xff]  ;;  %v30_v13 = vld [vmem:[%s226_s1 + $0x20] sm:$0xff]  ;;  %v32_v19 = vld [vmem:[%s226_s1 + $0x30] sm:$0xff] }
   0x5   :  { %56 = vst [vmem:[%s227_s2] sm:$0xff] %v41_v3  ;;  %v44_v12 = vadd.f32 %v29_v10, %v14_v9  ;;  %v45_v16 = vadd.f32 %v30_v13, %v15_v11  ;;  %v33_v22 = vld [vmem:[%s226_s1 + $0x38] sm:$0xff]  ;;  %v34_v24 = vld [vmem:[%s226_s1 + $0x40] sm:$0xff]  ;;  %v35_v28 = vld [vmem:[%s226_s1 + $0x48] sm:$0xff] }
   0x6   :  { %v36_v31 = vld [vmem:[%s226_s1 + $0x50] sm:$0xff]  ;;  %v37_v33 = vld [vmem:[%s226_s1 + $0x58] sm:$0xff]  ;;  %v38_v37 = vld [vmem:[%s226_s1 + $0x60] sm:$0xff] }
   0x7   :  { %v39_v40 = vld [vmem:[%s226_s1 + $0x68] sm:$0xff]  ;;  %v40_v42 = vld [vmem:[%s226_s1 + $0x70] sm:$0xff] }
   0xc   :  { %v16_v14 = vld [vmem:[%s225_s0 + $0x28] sm:$0xff] }
   0xd   :  { %57 = vst [vmem:[%s227_s2 + $0x8] sm:$0xff] %v42_v7  ;;  %58 = vst [vmem:[%s227_s2 + $0x10] sm:$0xff] %v43_v8  ;;  %v46_v17 = vadd.f32 %v31_v15, %v16_v14 }
  0x14   :  { %v17_v18 = vld [vmem:[%s225_s0 + $0x30] sm:$0xff]  ;;  %v18_v20 = vld [vmem:[%s225_s0 + $0x38] sm:$0xff] }
  0x15   :  { %59 = vst [vmem:[%s227_s2 + $0x18] sm:$0xff] %v44_v12  ;;  %v47_v21 = vadd.f32 %v32_v19, %v17_v18  ;;  %v48_v25 = vadd.f32 %v33_v22, %v18_v20 }
  0x1c   :  { %v19_v23 = vld [vmem:[%s225_s0 + $0x40] sm:$0xff] }
  0x1d   :  { %60 = vst [vmem:[%s227_s2 + $0x20] sm:$0xff] %v45_v16  ;;  %61 = vst [vmem:[%s227_s2 + $0x28] sm:$0xff] %v46_v17  ;;  %v49_v26 = vadd.f32 %v34_v24, %v19_v23 }
  0x24   :  { %v20_v27 = vld [vmem:[%s225_s0 + $0x48] sm:$0xff]  ;;  %v21_v29 = vld [vmem:[%s225_s0 + $0x50] sm:$0xff] }
  0x25   :  { %62 = vst [vmem:[%s227_s2 + $0x30] sm:$0xff] %v47_v21  ;;  %v50_v30 = vadd.f32 %v35_v28, %v20_v27  ;;  %v51_v34 = vadd.f32 %v36_v31, %v21_v29 }
  0x2c   :  { %v22_v32 = vld [vmem:[%s225_s0 + $0x58] sm:$0xff] }
  0x2d   :  { %63 = vst [vmem:[%s227_s2 + $0x38] sm:$0xff] %v48_v25  ;;  %64 = vst [vmem:[%s227_s2 + $0x40] sm:$0xff] %v49_v26  ;;  %v52_v35 = vadd.f32 %v37_v33, %v22_v32 }
  0x34   :  { %v23_v36 = vld [vmem:[%s225_s0 + $0x60] sm:$0xff]  ;;  %v24_v38 = vld [vmem:[%s225_s0 + $0x68] sm:$0xff] }
  0x35   :  { %65 = vst [vmem:[%s227_s2 + $0x48] sm:$0xff] %v50_v30  ;;  %v53_v39 = vadd.f32 %v38_v37, %v23_v36  ;;  %v54_v43 = vadd.f32 %v39_v40, %v24_v38 }
  0x3c   :  { %v25_v41 = vld [vmem:[%s225_s0 + $0x70] sm:$0xff] }
  0x3d   :  { %66 = vst [vmem:[%s227_s2 + $0x50] sm:$0xff] %v51_v34  ;;  %67 = vst [vmem:[%s227_s2 + $0x58] sm:$0xff] %v52_v35  ;;  %v55_v44 = vadd.f32 %v40_v42, %v25_v41 }
  0x3e   :  { %68 = vst [vmem:[%s227_s2 + $0x60] sm:$0xff] %v53_v39  ;;  %69 = vst [vmem:[%s227_s2 + $0x68] sm:$0xff] %v54_v43 }
  0x3f   :  { %70 = vst [vmem:[%s227_s2 + $0x70] sm:$0xff] %v55_v44 }

</bundles_post_ra>
